<compile_context>
chip_gen: v6e
topology: v6e:2x2x1
jax: 0.10.0
libtpu: 0.0.40
codegen_flags: <defaults>
</compile_context>

<pallas_src>
import jax
import jax.numpy as jnp
from jax.experimental import pallas as pl
from jax.experimental.pallas import tpu as pltpu


def residual_block_kernel(x_ref, wb1_ref, b1_ref, wb2_ref, b2_ref, out_ref):
    # x_ref   : (1, H, W*C)      f32   activation (also the residual)
    # wbK_ref : (3*W*C, W*C)     bf16  banded conv weights (BN scale folded in),
    #                                  vertically stacked per kh tap
    # bK_ref  : (1, W*C)         f32   folded BatchNorm bias (tiled over W)
    # out_ref : (1, H, W*C)      f32
    _, H, WC = out_ref.shape

    x = x_ref[0]                                   # (H, WC) f32
    zero_row = jnp.zeros((1, WC), jnp.float32)

    def conv3x3(a, wb_ref):
        # out[h] = a[h-1] @ band0 + a[h] @ band1 + a[h+1] @ band2, done as a
        # single matmul with the kh-shifted copies stacked along the lane dim.
        up = jnp.concatenate([zero_row, a[:H - 1, :]], axis=0)   # a[h-1]
        dn = jnp.concatenate([a[1:, :], zero_row], axis=0)       # a[h+1]
        lhs = jnp.concatenate([up, a, dn], axis=1).astype(jnp.bfloat16)
        return jnp.dot(lhs, wb_ref[...], preferred_element_type=jnp.float32)

    # conv1 -> bn1 -> relu        (BN scale folded into wb1, only bias remains)
    h = jnp.maximum(conv3x3(x, wb1_ref) + b1_ref[...], 0.0)
    # conv2 -> bn2 -> + residual -> relu
    o = conv3x3(h, wb2_ref) + b2_ref[...] + x
    out_ref[0] = jnp.maximum(o, 0.0).astype(out_ref.dtype)


@jax.jit
def residual_block(x_nchw, w1, gamma1, beta1, rmean1, rvar1,
                   w2, gamma2, beta2, rmean2, rvar2, eps=1e-5):
    """x_nchw: (N, C, H, W) float32; conv weights in PyTorch OIHW layout."""
    N, C, H, W = x_nchw.shape
    WC = W * C

    # --- glue (would be precomputed / kept fused in a real pipeline) ---------
    # NCHW -> (N, H, W*C) with channel fastest along the lane dim.
    x = jnp.transpose(x_nchw, (0, 2, 3, 1)).reshape(N, H, WC).astype(jnp.float32)

    w1_hwio = jnp.transpose(w1, (2, 3, 1, 0))     # (kh, kw, Cin, Cout)
    w2_hwio = jnp.transpose(w2, (2, 3, 1, 0))

    def fold_bn(gamma, beta, rmean, rvar):
        s = gamma / jnp.sqrt(rvar + eps)
        b = beta - rmean * s
        return (jnp.tile(s, W).reshape(1, WC).astype(jnp.float32),
                jnp.tile(b, W).reshape(1, WC).astype(jnp.float32))

    def make_banded(w_hwio, s_flat):
        # band[kh][w'*C + ci, w*C + co] = w_hwio[kh, kw, ci, co] * s[co] with
        # kw = w' - w + 1 (W zero-padding is implicit in the band structure).
        bands = []
        for kh in range(3):
            band = jnp.zeros((WC, WC), jnp.float32)
            for kw in range(3):
                sel = jnp.eye(W, k=1 - kw, dtype=jnp.float32)   # sel[w', w]
                band = band + jnp.einsum('pq,ij->piqj', sel,
                                         w_hwio[kh, kw]).reshape(WC, WC)
            bands.append(band * s_flat)                          # fold BN scale
        # stacked vertically to match lhs = [a[h-1] | a[h] | a[h+1]]
        return jnp.concatenate(bands, axis=0).astype(jnp.bfloat16)   # (3*WC, WC)

    s1, b1 = fold_bn(gamma1, beta1, rmean1, rvar1)
    s2, b2 = fold_bn(gamma2, beta2, rmean2, rvar2)
    wb1 = make_banded(w1_hwio, s1)
    wb2 = make_banded(w2_hwio, s2)

    # --- pallas call ---------------------------------------------------------
    flops = 2 * N * 2 * H * (3 * WC) * WC            # 2 convs x 2*M*K*N
    bytes_accessed = 2 * N * H * WC * 4 + 2 * 3 * WC * WC * 2 + 2 * WC * 4

    out_flat = pl.pallas_call(
        residual_block_kernel,
        out_shape=jax.ShapeDtypeStruct((N, H, WC), jnp.float32),
        grid_spec=pltpu.PrefetchScalarGridSpec(
            num_scalar_prefetch=0,
            grid=(N,),
            in_specs=[
                pl.BlockSpec((1, H, WC), lambda n: (n, 0, 0)),      # x
                pl.BlockSpec((3 * WC, WC), lambda n: (0, 0)),       # wb1
                pl.BlockSpec((1, WC), lambda n: (0, 0)),            # b1
                pl.BlockSpec((3 * WC, WC), lambda n: (0, 0)),       # wb2
                pl.BlockSpec((1, WC), lambda n: (0, 0)),            # b2
            ],
            out_specs=pl.BlockSpec((1, H, WC), lambda n: (n, 0, 0)),
        ),
        compiler_params=pltpu.CompilerParams(dimension_semantics=("parallel",)),
        cost_estimate=pl.CostEstimate(flops=flops, transcendentals=0,
                                      bytes_accessed=bytes_accessed),
    )(x, wb1, b1, wb2, b2)

    out = out_flat.reshape(N, H, W, C)
    return jnp.transpose(out, (0, 3, 1, 2))          # back to NCHW


def _reference(x, w1, g1, be1, rm1, rv1, w2, g2, be2, rm2, rv2, eps=1e-5):
    # pure-JAX f32 reference matching PyTorch eval-mode forward
    def conv(xx, ww):
        return jax.lax.conv_general_dilated(
            xx, ww, (1, 1), ((1, 1), (1, 1)),
            dimension_numbers=("NCHW", "OIHW", "NCHW"))

    def bn(xx, g, b, rm, rv):
        s = g / jnp.sqrt(rv + eps)
        return xx * s[None, :, None, None] + (b - rm * s)[None, :, None, None]

    out = jax.nn.relu(bn(conv(x, w1), g1, be1, rm1, rv1))
    out = bn(conv(out, w2), g2, be2, rm2, rv2) + x
    return jax.nn.relu(out)


if __name__ == "__main__":
    N, C, H, W = 2, 8, 16, 16      # in_channels == out_channels, stride=1, W*C = 128
    key = jax.random.PRNGKey(0)
    keys = jax.random.split(key, 11)

    x = jax.random.normal(keys[0], (N, C, H, W), jnp.float32)
    w1 = jax.random.normal(keys[1], (C, C, 3, 3), jnp.float32) * 0.1
    w2 = jax.random.normal(keys[2], (C, C, 3, 3), jnp.float32) * 0.1
    gamma1 = 1.0 + 0.1 * jax.random.normal(keys[3], (C,), jnp.float32)
    beta1 = 0.1 * jax.random.normal(keys[4], (C,), jnp.float32)
    rmean1 = 0.1 * jax.random.normal(keys[5], (C,), jnp.float32)
    rvar1 = 1.0 + 0.1 * jnp.abs(jax.random.normal(keys[6], (C,), jnp.float32))
    gamma2 = 1.0 + 0.1 * jax.random.normal(keys[7], (C,), jnp.float32)
    beta2 = 0.1 * jax.random.normal(keys[8], (C,), jnp.float32)
    rmean2 = 0.1 * jax.random.normal(keys[9], (C,), jnp.float32)
    rvar2 = 1.0 + 0.1 * jnp.abs(jax.random.normal(keys[10], (C,), jnp.float32))

    out = residual_block(x, w1, gamma1, beta1, rmean1, rvar1,
                         w2, gamma2, beta2, rmean2, rvar2)
    out = jax.block_until_ready(out)

    ref = _reference(x, w1, gamma1, beta1, rmean1, rvar1,
                     w2, gamma2, beta2, rmean2, rvar2)
    assert out.shape == (N, C, H, W)
    # bf16 matmul operands with f32 accumulation -> slightly looser tolerance
    max_err = float(jnp.max(jnp.abs(out - ref)))
    assert jnp.allclose(out, ref, rtol=2e-2, atol=2e-2), \
        f"mismatch vs reference (max abs err {max_err})"

    print("KERNEL_OK")
</pallas_src>

<mosaic_0001>
module attributes {stable_mosaic.version = 11 : i64} {
  func.func @residual_block_kernel(%arg0: i32, %arg1: memref<1x16x128xf32, #tpu.memory_space<vmem>>, %arg2: memref<384x128xbf16, #tpu.memory_space<vmem>>, %arg3: memref<1x128xf32, #tpu.memory_space<vmem>>, %arg4: memref<384x128xbf16, #tpu.memory_space<vmem>>, %arg5: memref<1x128xf32, #tpu.memory_space<vmem>>, %arg6: memref<1x16x128xf32, #tpu.memory_space<vmem>>) attributes {dimension_semantics = [#tpu.dimension_semantics<parallel>], iteration_bounds = array<i64: 2>, scalar_prefetch = 0 : i64, scratch_operands = 0 : i64, tpu.core_type = #tpu.core_type<tc>, window_params = [{transform_indices = @transform_0, window_bounds = array<i64: 1, 16, 128>}, {pipeline_mode = #tpu.pipeline_mode<synchronous>, transform_indices = @transform_1, window_bounds = array<i64: 384, 128>}, {pipeline_mode = #tpu.pipeline_mode<synchronous>, transform_indices = @transform_2, window_bounds = array<i64: 1, 128>}, {pipeline_mode = #tpu.pipeline_mode<synchronous>, transform_indices = @transform_3, window_bounds = array<i64: 384, 128>}, {pipeline_mode = #tpu.pipeline_mode<synchronous>, transform_indices = @transform_4, window_bounds = array<i64: 1, 128>}, {transform_indices = @transform_5, window_bounds = array<i64: 1, 16, 128>}]} {
    %c0 = arith.constant 0 : index
    %c0_0 = arith.constant 0 : index
    %c0_1 = arith.constant 0 : index
    %0 = vector.load %arg1[%c0, %c0_0, %c0_1] : memref<1x16x128xf32, #tpu.memory_space<vmem>>, vector<1x16x128xf32>
    %1 = vector.shape_cast %0 : vector<1x16x128xf32> to vector<16x128xf32>
    %cst = arith.constant 0.000000e+00 : f32
    %2 = vector.broadcast %cst : f32 to vector<1x128xf32>
    %3 = vector.extract_strided_slice %1 {offsets = [0, 0], sizes = [15, 128], strides = [1, 1]} : vector<16x128xf32> to vector<15x128xf32>
    %4 = tpu.concatenate %2, %3 in 0 : vector<1x128xf32>, vector<15x128xf32> -> vector<16x128xf32>
    %5 = vector.extract_strided_slice %1 {offsets = [1, 0], sizes = [15, 128], strides = [1, 1]} : vector<16x128xf32> to vector<15x128xf32>
    %6 = tpu.concatenate %5, %2 in 0 : vector<15x128xf32>, vector<1x128xf32> -> vector<16x128xf32>
    %7 = tpu.concatenate %4, %1, %6 in 1 : vector<16x128xf32>, vector<16x128xf32>, vector<16x128xf32> -> vector<16x384xf32>
    %8 = arith.truncf %7 : vector<16x384xf32> to vector<16x384xbf16>
    %c0_2 = arith.constant 0 : index
    %c0_3 = arith.constant 0 : index
    %9 = vector.load %arg2[%c0_2, %c0_3] : memref<384x128xbf16, #tpu.memory_space<vmem>>, vector<384x128xbf16>
    %cst_4 = arith.constant dense<0.000000e+00> : vector<16x128xf32>
    %10 = tpu.matmul %8, %9, %cst_4 {dimension_numbers = #tpu.dot_dimension_numbers<[1], [0], [0], [1], [0, 0, 1, 1], [], []>} : vector<16x384xbf16>, vector<384x128xbf16>, vector<16x128xf32> -> vector<16x128xf32>
    %c0_5 = arith.constant 0 : index
    %c0_6 = arith.constant 0 : index
    %11 = vector.load %arg3[%c0_5, %c0_6] : memref<1x128xf32, #tpu.memory_space<vmem>>, vector<1x128xf32>
    %12 = vector.broadcast %11 : vector<1x128xf32> to vector<16x128xf32>
    %13 = arith.addf %10, %12 : vector<16x128xf32>
    %cst_7 = arith.constant 0.000000e+00 : f32
    %14 = vector.broadcast %cst_7 : f32 to vector<16x128xf32>
    %15 = arith.maximumf %13, %14 : vector<16x128xf32>
    %16 = vector.extract_strided_slice %15 {offsets = [0, 0], sizes = [15, 128], strides = [1, 1]} : vector<16x128xf32> to vector<15x128xf32>
    %17 = tpu.concatenate %2, %16 in 0 : vector<1x128xf32>, vector<15x128xf32> -> vector<16x128xf32>
    %18 = vector.extract_strided_slice %15 {offsets = [1, 0], sizes = [15, 128], strides = [1, 1]} : vector<16x128xf32> to vector<15x128xf32>
    %19 = tpu.concatenate %18, %2 in 0 : vector<15x128xf32>, vector<1x128xf32> -> vector<16x128xf32>
    %20 = tpu.concatenate %17, %15, %19 in 1 : vector<16x128xf32>, vector<16x128xf32>, vector<16x128xf32> -> vector<16x384xf32>
    %21 = arith.truncf %20 : vector<16x384xf32> to vector<16x384xbf16>
    %c0_8 = arith.constant 0 : index
    %c0_9 = arith.constant 0 : index
    %22 = vector.load %arg4[%c0_8, %c0_9] : memref<384x128xbf16, #tpu.memory_space<vmem>>, vector<384x128xbf16>
    %cst_10 = arith.constant dense<0.000000e+00> : vector<16x128xf32>
    %23 = tpu.matmul %21, %22, %cst_10 {dimension_numbers = #tpu.dot_dimension_numbers<[1], [0], [0], [1], [0, 0, 1, 1], [], []>} : vector<16x384xbf16>, vector<384x128xbf16>, vector<16x128xf32> -> vector<16x128xf32>
    %c0_11 = arith.constant 0 : index
    %c0_12 = arith.constant 0 : index
    %24 = vector.load %arg5[%c0_11, %c0_12] : memref<1x128xf32, #tpu.memory_space<vmem>>, vector<1x128xf32>
    %25 = vector.broadcast %24 : vector<1x128xf32> to vector<16x128xf32>
    %26 = arith.addf %23, %25 : vector<16x128xf32>
    %27 = arith.addf %26, %1 : vector<16x128xf32>
    %cst_13 = arith.constant 0.000000e+00 : f32
    %28 = vector.broadcast %cst_13 : f32 to vector<16x128xf32>
    %29 = arith.maximumf %27, %28 : vector<16x128xf32>
    %c0_14 = arith.constant 0 : index
    %c0_15 = arith.constant 0 : index
    %c0_16 = arith.constant 0 : index
    %30 = vector.load %arg6[%c0_14, %c0_15, %c0_16] : memref<1x16x128xf32, #tpu.memory_space<vmem>>, vector<1x16x128xf32>
    %31 = vector.shape_cast %30 : vector<1x16x128xf32> to vector<16x128xf32>
    %32 = vector.shape_cast %29 : vector<16x128xf32> to vector<1x16x128xf32>
    tpu.vector_store %arg6[%c0_14, %c0_15, %c0_16], %32 {strides = array<i32>} : memref<1x16x128xf32, #tpu.memory_space<vmem>>, vector<1x16x128xf32>,
    return
  }
  func.func @transform_0(%arg0: i32) -> (i32, i32, i32) {
    %c0_i32 = arith.constant 0 : i32
    %c0_i32_0 = arith.constant 0 : i32
    %c0_i32_1 = arith.constant 0 : i32
    return %arg0, %c0_i32, %c0_i32_0 : i32, i32, i32
  }
  func.func @transform_1(%arg0: i32) -> (i32, i32) {
    %c0_i32 = arith.constant 0 : i32
    %c0_i32_0 = arith.constant 0 : i32
    %c0_i32_1 = arith.constant 0 : i32
    return %c0_i32, %c0_i32_0 : i32, i32
  }
  func.func @transform_2(%arg0: i32) -> (i32, i32) {
    %c0_i32 = arith.constant 0 : i32
    %c0_i32_0 = arith.constant 0 : i32
    %c0_i32_1 = arith.constant 0 : i32
    return %c0_i32, %c0_i32_0 : i32, i32
  }
  func.func @transform_3(%arg0: i32) -> (i32, i32) {
    %c0_i32 = arith.constant 0 : i32
    %c0_i32_0 = arith.constant 0 : i32
    %c0_i32_1 = arith.constant 0 : i32
    return %c0_i32, %c0_i32_0 : i32, i32
  }
  func.func @transform_4(%arg0: i32) -> (i32, i32) {
    %c0_i32 = arith.constant 0 : i32
    %c0_i32_0 = arith.constant 0 : i32
    %c0_i32_1 = arith.constant 0 : i32
    return %c0_i32, %c0_i32_0 : i32, i32
  }
  func.func @transform_5(%arg0: i32) -> (i32, i32, i32) {
    %c0_i32 = arith.constant 0 : i32
    %c0_i32_0 = arith.constant 0 : i32
    %c0_i32_1 = arith.constant 0 : i32
    return %arg0, %c0_i32, %c0_i32_0 : i32, i32, i32
  }
}

</mosaic_0001>

<bundles_post_ra>
// kernel: tile.33
= control target key start
LH: loop header
LB: loop body
LE: loop exit
PB: predicated region body
PF: predicated region fallthrough
CT: control target
= control target key end

     0   :  { %s28_s0 = inlined_call_operand.vmem [shape: f32[8], index: 0, kind: input, shape index: {}]   ;;  %s29_s1 = inlined_call_operand.vmem [shape: f32[16,8], index: 1, kind: output, shape index: {}]  }
   0x1   :  { %v4_v0 = vld [vmem:[%s28_s0] ss:$0 sm:$0xff] }
   0x2   :  { %5 = vst [vmem:[%s29_s1] sm:$0xff] %v4_v0  ;;  %8 = vst [vmem:[%s29_s1 + $0x8] sm:$0xff] %v4_v0 }

// kernel: mul.41
= control target key start
LH: loop header
LB: loop body
LE: loop exit
PB: predicated region body
PF: predicated region fallthrough
CT: control target
= control target key end

     0   :  { %s133_s10 = smov 120   ;;  %s134_s11 = smov 104   ;;  %vm3_vm0 = vcmask 64512   ;;  %vm9_vm1 = vcmask 1048512   ;;  %vm15_vm2 = vcmask 982912   ;;  %vm21_vm3 = vcmask 917312   ;;  %s209_s0 = inlined_call_operand.vmem [shape: f32[16,8], index: 0, kind: input, shape index: {}]   ;;  %s210_s1 = inlined_call_operand.vmem [shape: f32[128], index: 1, kind: output, shape index: {}]  }
   0x1   :  { %v103_v0 = vld [vmem:[%s209_s0 + $0xf] sm:$0x1]   ;;  %v105_v1 = vld [vmem:[%s209_s0 + $0xd] sm:$0x1]   ;;  %v104_v2 = vld [vmem:[%s209_s0 + $0xe] sm:$0x1]  }
   0x2   :  { %7 = vrot.lane.b32.xlu0 %v103_v0, %s133_s10  ;;  %19 = vrot.lane.b32.xlu1 %v105_v1, %s134_s11  ;;  %v106_v3 = vld [vmem:[%s209_s0 + $0xc] sm:$0x1]   ;;  %s135_s16 = smov 112   ;;  %s136_s17 = smov 96   ;;  %v107_v4 = vld [vmem:[%s209_s0 + $0xb] sm:$0x1]  }
   0x3   :  { %v108_v5 = vld [vmem:[%s209_s0 + $0xa] sm:$0x1]   ;;  %v2_v6 = vld [vmem:[%s209_s0] sm:$0x1]   ;;  %s137_s24 = smov 88   ;;  %s138_s25 = smov 80  }
   0x4   :  { %4 = vst.msk [vmem:[#allocation0] sm:$0x1] %vm3_vm0, %v2_v6   ;;  %v109_v7 = vld [vmem:[%s209_s0 + $0x9] sm:$0x1]   ;;  %v110_v8 = vld [vmem:[%s209_s0 + $0x8] sm:$0x1]  }
   0x5   :  { %s139_s30 = smov 72   ;;  %s140_s2 = smov 64   ;;  %v111_v9 = vld [vmem:[%s209_s0 + $0x7] sm:$0x1]   ;;  %v112_v10 = vld [vmem:[%s209_s0 + $0x6] sm:$0x1]  }
   0x6   :  { %13 = vrot.lane.b32.xlu0 %v104_v2, %s135_s16  ;;  %25 = vrot.lane.b32.xlu1 %v106_v3, %s136_s17  ;;  %s141_s7 = smov 56   ;;  %s142_s8 = smov 48   ;;  %v113_v11 = vld [vmem:[%s209_s0 + $0x5] sm:$0x1]   ;;  %v114_v12 = vld [vmem:[%s209_s0 + $0x4] sm:$0x1]  }
   0x7   :  { %s143_s13 = smov 40   ;;  %s144_s14 = smov 32   ;;  %v115_v13 = vld [vmem:[%s209_s0 + $0x3] sm:$0x1]   ;;  %v116_v14 = vld [vmem:[%s209_s0 + $0x2] sm:$0x1]  }
   0x8   :  { %s145_s19 = smov 24   ;;  %s146_s20 = smov 16   ;;  %v117_v15 = vld [vmem:[%s209_s0 + $0x1] sm:$0x1]   ;;  %vm27_vm4 = vcmask 851712   ;;  %vm33_vm5 = vcmask 786112  }
   0x9   :  { %s147_s0 = smov 8   ;;  %vm39_vm6 = vcmask 720512   ;;  %vm45_vm7 = vcmask 654912   ;;  %vm51_vm8 = vcmask 589312   ;;  %vm57_vm9 = vcmask 523712  }
   0xa   :  { %31 = vrot.lane.b32.xlu0 %v107_v4, %s137_s24  ;;  %37 = vrot.lane.b32.xlu1 %v108_v5, %s138_s25  ;;  %vm63_vm10 = vcmask 458112   ;;  %vm69_vm11 = vcmask 392512   ;;  %vm75_vm12 = vcmask 326912   ;;  %vm81_vm13 = vcmask 261312  }
   0xb   :  { %vm87_vm14 = vcmask 195712   ;;  %vm93_vm15 = vcmask 130112  }
   0xe   :  { %43 = vrot.lane.b32.xlu0 %v109_v7, %s139_s30  ;;  %49 = vrot.lane.b32.xlu1 %v110_v8, %s140_s2 }
  0x12   :  { %55 = vrot.lane.b32.xlu0 %v111_v9, %s141_s7  ;;  %61 = vrot.lane.b32.xlu1 %v112_v10, %s142_s8 }
  0x16   :  { %67 = vrot.lane.b32.xlu0 %v113_v11, %s143_s13  ;;  %73 = vrot.lane.b32.xlu1 %v114_v12, %s144_s14 }
  0x1a   :  { %79 = vrot.lane.b32.xlu0 %v115_v13, %s145_s19  ;;  %85 = vrot.lane.b32.xlu1 %v116_v14, %s146_s20 }
  0x1e   :  { %91 = vrot.lane.b32.xlu0 %v117_v15, %s147_s0 }
  0x74   :  { %v8_v16 = vpop.permute.xlu0 %7   ;;  %v20_v17 = vpop.permute.xlu1 %19  }
  0x75   :  { %10 = vst.msk [vmem:[#allocation0] sm:$0x1] %vm9_vm1, %v8_v16  }
  0x78   :  { %v14_v18 = vpop.permute.xlu0 %13   ;;  %v26_v19 = vpop.permute.xlu1 %25  }
  0x79   :  { %16 = vst.msk [vmem:[#allocation0] sm:$0x1] %vm15_vm2, %v14_v18  }
  0x7a   :  { %22 = vst.msk [vmem:[#allocation0] sm:$0x1] %vm21_vm3, %v20_v17  }
  0x7b   :  { %28 = vst.msk [vmem:[#allocation0] sm:$0x1] %vm27_vm4, %v26_v19  }
  0x7c   :  { %v32_v20 = vpop.permute.xlu0 %31   ;;  %v38_v21 = vpop.permute.xlu1 %37  }
  0x7d   :  { %34 = vst.msk [vmem:[#allocation0] sm:$0x1] %vm33_vm5, %v32_v20  }
  0x7e   :  { %40 = vst.msk [vmem:[#allocation0] sm:$0x1] %vm39_vm6, %v38_v21  }
  0x80   :  { %v44_v22 = vpop.permute.xlu0 %43   ;;  %v50_v23 = vpop.permute.xlu1 %49  }
  0x81   :  { %46 = vst.msk [vmem:[#allocation0] sm:$0x1] %vm45_vm7, %v44_v22  }
  0x82   :  { %52 = vst.msk [vmem:[#allocation0] sm:$0x1] %vm51_vm8, %v50_v23  }
  0x84   :  { %v56_v24 = vpop.permute.xlu0 %55   ;;  %v62_v25 = vpop.permute.xlu1 %61  }
  0x85   :  { %58 = vst.msk [vmem:[#allocation0] sm:$0x1] %vm57_vm9, %v56_v24  }
  0x86   :  { %64 = vst.msk [vmem:[#allocation0] sm:$0x1] %vm63_vm10, %v62_v25  }
  0x88   :  { %v68_v26 = vpop.permute.xlu0 %67   ;;  %v74_v27 = vpop.permute.xlu1 %73  }
  0x89   :  { %70 = vst.msk [vmem:[#allocation0] sm:$0x1] %vm69_vm11, %v68_v26  }
  0x8a   :  { %76 = vst.msk [vmem:[#allocation0] sm:$0x1] %vm75_vm12, %v74_v27  }
  0x8c   :  { %v80_v28 = vpop.permute.xlu0 %79   ;;  %v86_v29 = vpop.permute.xlu1 %85  }
  0x8d   :  { %82 = vst.msk [vmem:[#allocation0] sm:$0x1] %vm81_vm13, %v80_v28  }
  0x8e   :  { %88 = vst.msk [vmem:[#allocation0] sm:$0x1] %vm87_vm14, %v86_v29  }
  0x90   :  { %v92_v30 = vpop.permute.xlu0 %91  }
  0x91   :  { %94 = vst.msk [vmem:[#allocation0] sm:$0x1] %vm93_vm15, %v92_v30  }
  0x98   :  { %v99_v31 = vld [vmem:[#allocation0] sm:$0x1] }
  0x99   :  { %102 = vst [vmem:[%s210_s1] sm:$0x1] %v99_v31 }

// kernel: tile.29
= control target key start
LH: loop header
LB: loop body
LE: loop exit
PB: predicated region body
PF: predicated region fallthrough
CT: control target
= control target key end

     0   :  { %s133_s10 = smov 120   ;;  %s134_s11 = smov 104   ;;  %vm3_vm0 = vcmask 64512   ;;  %vm9_vm1 = vcmask 1048512   ;;  %vm15_vm2 = vcmask 982912   ;;  %vm21_vm3 = vcmask 917312   ;;  %s209_s0 = inlined_call_operand.vmem [shape: f32[16,8], index: 0, kind: input, shape index: {}]   ;;  %s210_s1 = inlined_call_operand.vmem [shape: f32[1,128], index: 1, kind: output, shape index: {}]  }
   0x1   :  { %v103_v0 = vld [vmem:[%s209_s0 + $0xf] sm:$0x1]   ;;  %v105_v1 = vld [vmem:[%s209_s0 + $0xd] sm:$0x1]   ;;  %v104_v2 = vld [vmem:[%s209_s0 + $0xe] sm:$0x1]  }
   0x2   :  { %7 = vrot.lane.b32.xlu0 %v103_v0, %s133_s10  ;;  %19 = vrot.lane.b32.xlu1 %v105_v1, %s134_s11  ;;  %v106_v3 = vld [vmem:[%s209_s0 + $0xc] sm:$0x1]   ;;  %s135_s16 = smov 112   ;;  %s136_s17 = smov 96   ;;  %v107_v4 = vld [vmem:[%s209_s0 + $0xb] sm:$0x1]  }
   0x3   :  { %v108_v5 = vld [vmem:[%s209_s0 + $0xa] sm:$0x1]   ;;  %v2_v6 = vld [vmem:[%s209_s0] sm:$0x1]   ;;  %s137_s24 = smov 88   ;;  %s138_s25 = smov 80  }
   0x4   :  { %4 = vst.msk [vmem:[#allocation0] sm:$0x1] %vm3_vm0, %v2_v6   ;;  %v109_v7 = vld [vmem:[%s209_s0 + $0x9] sm:$0x1]   ;;  %v110_v8 = vld [vmem:[%s209_s0 + $0x8] sm:$0x1]  }
   0x5   :  { %s139_s30 = smov 72   ;;  %s140_s2 = smov 64   ;;  %v111_v9 = vld [vmem:[%s209_s0 + $0x7] sm:$0x1]   ;;  %v112_v10 = vld [vmem:[%s209_s0 + $0x6] sm:$0x1]  }
   0x6   :  { %13 = vrot.lane.b32.xlu0 %v104_v2, %s135_s16  ;;  %25 = vrot.lane.b32.xlu1 %v106_v3, %s136_s17  ;;  %s141_s7 = smov 56   ;;  %s142_s8 = smov 48   ;;  %v113_v11 = vld [vmem:[%s209_s0 + $0x5] sm:$0x1]   ;;  %v114_v12 = vld [vmem:[%s209_s0 + $0x4] sm:$0x1]  }
   0x7   :  { %s143_s13 = smov 40   ;;  %s144_s14 = smov 32   ;;  %v115_v13 = vld [vmem:[%s209_s0 + $0x3] sm:$0x1]   ;;  %v116_v14 = vld [vmem:[%s209_s0 + $0x2] sm:$0x1]  }
   0x8   :  { %s145_s19 = smov 24   ;;  %s146_s20 = smov 16   ;;  %v117_v15 = vld [vmem:[%s209_s0 + $0x1] sm:$0x1]   ;;  %vm27_vm4 = vcmask 851712   ;;  %vm33_vm5 = vcmask 786112  }
   0x9   :  { %s147_s0 = smov 8   ;;  %vm39_vm6 = vcmask 720512   ;;  %vm45_vm7 = vcmask 654912   ;;  %vm51_vm8 = vcmask 589312   ;;  %vm57_vm9 = vcmask 523712  }
   0xa   :  { %31 = vrot.lane.b32.xlu0 %v107_v4, %s137_s24  ;;  %37 = vrot.lane.b32.xlu1 %v108_v5, %s138_s25  ;;  %vm63_vm10 = vcmask 458112   ;;  %vm69_vm11 = vcmask 392512   ;;  %vm75_vm12 = vcmask 326912   ;;  %vm81_vm13 = vcmask 261312  }
   0xb   :  { %vm87_vm14 = vcmask 195712   ;;  %vm93_vm15 = vcmask 130112  }
   0xe   :  { %43 = vrot.lane.b32.xlu0 %v109_v7, %s139_s30  ;;  %49 = vrot.lane.b32.xlu1 %v110_v8, %s140_s2 }
  0x12   :  { %55 = vrot.lane.b32.xlu0 %v111_v9, %s141_s7  ;;  %61 = vrot.lane.b32.xlu1 %v112_v10, %s142_s8 }
  0x16   :  { %67 = vrot.lane.b32.xlu0 %v113_v11, %s143_s13  ;;  %73 = vrot.lane.b32.xlu1 %v114_v12, %s144_s14 }
  0x1a   :  { %79 = vrot.lane.b32.xlu0 %v115_v13, %s145_s19  ;;  %85 = vrot.lane.b32.xlu1 %v116_v14, %s146_s20 }
  0x1e   :  { %91 = vrot.lane.b32.xlu0 %v117_v15, %s147_s0 }
  0x74   :  { %v8_v16 = vpop.permute.xlu0 %7   ;;  %v20_v17 = vpop.permute.xlu1 %19  }
  0x75   :  { %10 = vst.msk [vmem:[#allocation0] sm:$0x1] %vm9_vm1, %v8_v16  }
  0x78   :  { %v14_v18 = vpop.permute.xlu0 %13   ;;  %v26_v19 = vpop.permute.xlu1 %25  }
  0x79   :  { %16 = vst.msk [vmem:[#allocation0] sm:$0x1] %vm15_vm2, %v14_v18  }
  0x7a   :  { %22 = vst.msk [vmem:[#allocation0] sm:$0x1] %vm21_vm3, %v20_v17  }
  0x7b   :  { %28 = vst.msk [vmem:[#allocation0] sm:$0x1] %vm27_vm4, %v26_v19  }
  0x7c   :  { %v32_v20 = vpop.permute.xlu0 %31   ;;  %v38_v21 = vpop.permute.xlu1 %37  }
  0x7d   :  { %34 = vst.msk [vmem:[#allocation0] sm:$0x1] %vm33_vm5, %v32_v20  }
  0x7e   :  { %40 = vst.msk [vmem:[#allocation0] sm:$0x1] %vm39_vm6, %v38_v21  }
  0x80   :  { %v44_v22 = vpop.permute.xlu0 %43   ;;  %v50_v23 = vpop.permute.xlu1 %49  }
  0x81   :  { %46 = vst.msk [vmem:[#allocation0] sm:$0x1] %vm45_vm7, %v44_v22  }
  0x82   :  { %52 = vst.msk [vmem:[#allocation0] sm:$0x1] %vm51_vm8, %v50_v23  }
  0x84   :  { %v56_v24 = vpop.permute.xlu0 %55   ;;  %v62_v25 = vpop.permute.xlu1 %61  }
  0x85   :  { %58 = vst.msk [vmem:[#allocation0] sm:$0x1] %vm57_vm9, %v56_v24  }
  0x86   :  { %64 = vst.msk [vmem:[#allocation0] sm:$0x1] %vm63_vm10, %v62_v25  }
  0x88   :  { %v68_v26 = vpop.permute.xlu0 %67   ;;  %v74_v27 = vpop.permute.xlu1 %73  }
  0x89   :  { %70 = vst.msk [vmem:[#allocation0] sm:$0x1] %vm69_vm11, %v68_v26  }
  0x8a   :  { %76 = vst.msk [vmem:[#allocation0] sm:$0x1] %vm75_vm12, %v74_v27  }
  0x8c   :  { %v80_v28 = vpop.permute.xlu0 %79   ;;  %v86_v29 = vpop.permute.xlu1 %85  }
  0x8d   :  { %82 = vst.msk [vmem:[#allocation0] sm:$0x1] %vm81_vm13, %v80_v28  }
  0x8e   :  { %88 = vst.msk [vmem:[#allocation0] sm:$0x1] %vm87_vm14, %v86_v29  }
  0x90   :  { %v92_v30 = vpop.permute.xlu0 %91  }
  0x91   :  { %94 = vst.msk [vmem:[#allocation0] sm:$0x1] %vm93_vm15, %v92_v30  }
  0x98   :  { %v99_v31 = vld [vmem:[#allocation0] sm:$0x1] }
  0x99   :  { %102 = vst [vmem:[%s210_s1] sm:$0x1] %v99_v31 }

// kernel: residual_block.1
= control target key start
LH: loop header
LB: loop body
LE: loop exit
PB: predicated region body
PF: predicated region fallthrough
CT: control target
= control target key end

     0   :  { %s1168_s18 = smov 0   ;;  %s1400_s0 = inlined_call_operand.vmem [shape: f32[2,16,128], index: 0, kind: input, shape index: {}]   ;;  %s1401_s1 = inlined_call_operand.vmem [shape: bf16[384,128], index: 1, kind: input, shape index: {}]   ;;  %s1402_s2 = inlined_call_operand.vmem [shape: f32[1,128], index: 2, kind: input, shape index: {}]   ;;  %s1403_s3 = inlined_call_operand.vmem [shape: bf16[384,128], index: 3, kind: input, shape index: {}]   ;;  %s1404_s4 = inlined_call_operand.vmem [shape: f32[1,128], index: 4, kind: input, shape index: {}]   ;;  %s1405_s5 = inlined_call_operand.vmem [shape: f32[2,16,128], index: 5, kind: output, shape index: {}]  }
   0x1 LB: > { %s889_s19 = sadd.s32 4294967295, %s1133_s18   ;;  %p893_p0 = scmp.ge.s32.totalorder %s1133_s18, 1  ;;  %s1133_s18 = sphi %s1168_s18, %s15_s18  }
   0x2   : > { %p187_p1 = scmp.lt.s32.totalorder %s1133_s18, 3 }
   0x4   : > { %p188_p2 = pnand %p893_p0, %p187_p1 }
   0x5   : > { %p215_p3 = scmp.lt.s32.totalorder (!%p188_p2), %s889_s19, 1 }
   0x6   : > { %191 = sbr.rel (%p188_p2) target bundleno = 466 (0x1d2), region = 40 }
   0xb   : > { %v1079_v0 = vld [vmem:[%s1401_s1 + $0x78] sm:$0xff]   ;;  %v1135_v1 = vmov 0.0   ;;  %v1082_v4 = vld [vmem:[%s1401_s1 + $0x70] sm:$0xff]   ;;  %vm1136_vm0 = vmmov 0   ;;  %v1085_v7 = vld [vmem:[%s1401_s1 + $0x68] sm:$0xff]   ;;  %s1411_s19 = smov (!%p215_p3, %s889_s19), 1 }
   0xc   : > { %1028 = vmatprep.subr.bf16.mxu1 %v1135_v1  ;;  %v1080_v2 = vld [vmem:[%s1401_s1 + $0x38] sm:$0xff]   ;;  %966 = vmatprep.subr.bf16.mxu0 %v1079_v0  ;;  %v1083_v5 = vld [vmem:[%s1401_s1 + $0x30] sm:$0xff]   ;;  %v1086_v8 = vld [vmem:[%s1401_s1 + $0x28] sm:$0xff]   ;;  %s964_s6 = sshll.u32 %s1411_s19, 4  ;;  %vm230_vm1 = vcmask 1040384   ;;  %vm237_vm3 = vcmask 1046528  }
   0xd   : > { %v1081_v3 = vld [vmem:[%s1401_s1 + $0xb8] sm:$0xff]   ;;  %967 = vmatpush3.bf16.msra.mxu0 %v1080_v2  ;;  %1044 = vmatprep.mubr.msk.bf16.mxu1 %vm1136_vm0, %v1135_v1  ;;  %v1084_v6 = vld [vmem:[%s1401_s1 + $0xb0] sm:$0xff]   ;;  %v1087_v9 = vld [vmem:[%s1401_s1 + $0xa8] sm:$0xff]   ;;  %s219_s15 = scalar_lea.vmem %s1400_s0, %s964_s6  ;;  %vm1137_vm4 = vmmov 1   ;;  %s224_s12 = scalar_lea.vmem %s1405_s5, %s964_s6 }
   0xe   : > { %1029 = vmatpush3.bf16.msra.mxu1 %v1081_v3  ;;  %968 = vmatprep.subr.bf16.mxu0 %v1082_v4  ;;  %v1088_v10 = vld [vmem:[%s1401_s1 + $0x60] sm:$0xff]   ;;  %v1091_v13 = vld [vmem:[%s1401_s1 + $0x58] sm:$0xff]   ;;  %v1094_v16 = vld [vmem:[%s1401_s1 + $0x50] sm:$0xff]  }
   0xf   : > { %1030 = vmatprep.subr.bf16.mxu1 %v1135_v1  ;;  %v1089_v11 = vld [vmem:[%s1401_s1 + $0x20] sm:$0xff]   ;;  %v1092_v14 = vld [vmem:[%s1401_s1 + $0x18] sm:$0xff]   ;;  %v1095_v17 = vld [vmem:[%s1401_s1 + $0x10] sm:$0xff]  }
  0x10   : > { %v1090_v12 = vld [vmem:[%s1401_s1 + $0xa0] sm:$0xff]   ;;  %v1093_v15 = vld [vmem:[%s1401_s1 + $0x98] sm:$0xff]   ;;  %v1096_v18 = vld [vmem:[%s1401_s1 + $0x90] sm:$0xff]  }
  0x11   : > { %969 = vmatpush3.bf16.msra.mxu0 %v1083_v5  ;;  %v1097_v19 = vld [vmem:[%s1401_s1 + $0x48] sm:$0xff]   ;;  %v1100_v22 = vld [vmem:[%s1401_s1 + $0x40] sm:$0xff]   ;;  %vm923_vm2 = vmneg %vm230_vm1 }
  0x12   : > { %1031 = vmatpush3.bf16.msra.mxu1 %v1084_v6  ;;  %970 = vmatprep.subr.bf16.mxu0 %v1085_v7  ;;  %v1098_v20 = vld [vmem:[%s1401_s1 + $0x8] sm:$0xff]   ;;  %v1262_v23 = vld [vmem:[%s219_s15] sm:$0xff]  ;;  %vm1281_vm5 = vmpackc.low %vm1137_vm4, %vm923_vm2 }
  0x13   : > { %1032 = vmatprep.subr.bf16.mxu1 %v1135_v1  ;;  %v1099_v21 = vld [vmem:[%s1401_s1 + $0x88] sm:$0xff]   ;;  %v231_v25 = vrot.slane %v1262_v23, 7  ;;  %v238_v27 = vrot.slane %v1262_v23, 1  ;;  %v1101_v29 = vld [vmem:[%s1401_s1] sm:$0xff]   ;;  %v1103_v35 = vld [vmem:[%s1403_s3 + $0x78] sm:$0xff]  }
  0x14   : > { %v1264_v24 = vld [vmem:[%s219_s15 + $0x8] sm:$0xff]  ;;  %v1102_v30 = vld [vmem:[%s1401_s1 + $0x80] sm:$0xff]   ;;  %vm1291_vm6 = vmpackc.low %vm237_vm3, %vm1137_vm4 }
  0x15   : > { %971 = vmatpush3.bf16.msra.mxu0 %v1086_v8  ;;  %v232_v26 = vrot.slane %v1264_v24, 7  ;;  %v239_v28 = vrot.slane %v1264_v24, 1  ;;  %v245_v31 = vpack.c.bf16 %v1264_v24, %v1262_v23  ;;  %v1104_v38 = vld [vmem:[%s1403_s3 + $0x38] sm:$0xff]   ;;  %v1106_v41 = vld [vmem:[%s1403_s3 + $0x70] sm:$0xff]   ;;  %v1109_v44 = vld [vmem:[%s1403_s3 + $0x68] sm:$0xff]  }
  0x16   : > { %1033 = vmatpush3.bf16.msra.mxu1 %v1087_v9  ;;  %972 = vmatprep.subr.bf16.mxu0 %v1088_v10  ;;  %v1105_v40 = vld [vmem:[%s1403_s3 + $0xb8] sm:$0xff]   ;;  %v1107_v42 = vld [vmem:[%s1403_s3 + $0x30] sm:$0xff]   ;;  %v1110_v45 = vld [vmem:[%s1403_s3 + $0x28] sm:$0xff]  }
  0x17   : > { %1034 = vmatprep.subr.bf16.mxu1 %v1135_v1  ;;  %v233_v32 = vsel %vm230_vm1, %v231_v25, %v232_v26  ;;  %v240_v34 = vsel %vm237_vm3, %v238_v27, %v239_v28  ;;  %478 = vmatprep.mubr.bf16.mxu0 %v245_v31  ;;  %v1108_v43 = vld [vmem:[%s1403_s3 + $0xb0] sm:$0xff]   ;;  %v1111_v46 = vld [vmem:[%s1403_s3 + $0xa8] sm:$0xff]   ;;  %v1112_v47 = vld [vmem:[%s1403_s3 + $0x60] sm:$0xff]  }
  0x18   : > { %v925_v37 = vpack.c.bf16 %v233_v32, %v231_v25  ;;  %v928_v39 = vpack.c.bf16 %v239_v28, %v240_v34  ;;  %v1113_v48 = vld [vmem:[%s1403_s3 + $0x20] sm:$0xff]   ;;  %v1115_v50 = vld [vmem:[%s1403_s3 + $0x58] sm:$0xff]   ;;  %v1118_v53 = vld [vmem:[%s1403_s3 + $0x50] sm:$0xff]  }
  0x19   : > { %973 = vmatpush3.bf16.msra.mxu0 %v1089_v11  ;;  %v1114_v49 = vld [vmem:[%s1403_s3 + $0xa0] sm:$0xff]   ;;  %v1116_v51 = vld [vmem:[%s1403_s3 + $0x18] sm:$0xff]   ;;  %v1119_v54 = vld [vmem:[%s1403_s3 + $0x10] sm:$0xff]  }
  0x1a   : > { %1035 = vmatpush3.bf16.msra.mxu1 %v1090_v12  ;;  %974 = vmatprep.subr.bf16.mxu0 %v1091_v13  ;;  %v1117_v52 = vld [vmem:[%s1403_s3 + $0x98] sm:$0xff]   ;;  %v1120_v55 = vld [vmem:[%s1403_s3 + $0x90] sm:$0xff]   ;;  %v1121_v56 = vld [vmem:[%s1403_s3 + $0x48] sm:$0xff]  }
  0x1b   : > { %1036 = vmatprep.subr.bf16.mxu1 %v1135_v1  ;;  %v1122_v57 = vld [vmem:[%s1403_s3 + $0x8] sm:$0xff]   ;;  %v1124_v59 = vld [vmem:[%s1403_s3 + $0x40] sm:$0xff]  }
  0x1c   : > { %v1123_v58 = vld [vmem:[%s1403_s3 + $0x88] sm:$0xff]   ;;  %v1125_v60 = vld [vmem:[%s1403_s3] sm:$0xff]  }
  0x1d   : > { %975 = vmatpush3.bf16.msra.mxu0 %v1092_v14  ;;  %v1126_v61 = vld [vmem:[%s1403_s3 + $0x80] sm:$0xff]  }
  0x1e   : > { %1037 = vmatpush3.bf16.msra.mxu1 %v1093_v15  ;;  %976 = vmatprep.subr.bf16.mxu0 %v1094_v16  ;;  %v898_v0 = vld [vmem:[%s1402_s2] ss:$0 sm:$0xff] }
  0x1f   : > { %1038 = vmatprep.subr.bf16.mxu1 %v1135_v1  ;;  %v930_v28 = vld [vmem:[%s1404_s4] ss:$0 sm:$0xff] }
  0x21   : > { %977 = vmatpush3.bf16.msra.mxu0 %v1095_v17 }
  0x22   : > { %1039 = vmatpush3.bf16.msra.mxu1 %v1096_v18  ;;  %978 = vmatprep.subr.bf16.mxu0 %v1097_v19 }
  0x23   : > { %1040 = vmatprep.subr.bf16.mxu1 %v1135_v1 }
  0x25   : > { %979 = vmatpush3.bf16.msra.mxu0 %v1098_v20 }
  0x26   : > { %1041 = vmatpush3.bf16.msra.mxu1 %v1099_v21  ;;  %980 = vmatprep.subr.bf16.mxu0 %v1100_v22 }
  0x27   : > { %1042 = vmatprep.subr.bf16.mxu1 %v1135_v1 }
  0x29   : > { %981 = vmatpush3.bf16.msra.mxu0 %v1101_v29 }
  0x2a   : > { %1043 = vmatpush3.bf16.msra.mxu1 %v1102_v30  ;;  %997 = vmatprep.subr.bf16.mxu0 %v1103_v35 }
  0x2b   : > { %1048 = vmatprep.subr.bf16.mxu1 %v1135_v1 }
  0x2c   : > { %926 = vmatmul.mubr.msk.bf16.vlgmr.msra.gmra.mxu0 %vm1281_vm5, %v925_v37 }
  0x2d   : > { %1045 = vmatmul.mubr.msk.bf16.vlgmr.msra.gmra.mxu1 %vm1291_vm6, %v928_v39  ;;  %998 = vmatpush3.bf16.msra.mxu0 %v1104_v38 }
  0x2e   : > { %1049 = vmatpush3.bf16.msra.mxu1 %v1105_v40  ;;  %999 = vmatprep.subr.bf16.mxu0 %v1106_v41 }
  0x2f   : > { %1050 = vmatprep.subr.bf16.mxu1 %v1135_v1  ;;  %1064 = vmatprep.mubr.msk.bf16.mxu1 %vm1136_vm0, %v1135_v1 }
  0x31   : > { %1000 = vmatpush3.bf16.msra.mxu0 %v1107_v42 }
  0x32   : > { %1051 = vmatpush3.bf16.msra.mxu1 %v1108_v43  ;;  %1001 = vmatprep.subr.bf16.mxu0 %v1109_v44 }
  0x33   : > { %1052 = vmatprep.subr.bf16.mxu1 %v1135_v1 }
  0x35   : > { %1002 = vmatpush3.bf16.msra.mxu0 %v1110_v45 }
  0x36   : > { %1053 = vmatpush3.bf16.msra.mxu1 %v1111_v46  ;;  %1003 = vmatprep.subr.bf16.mxu0 %v1112_v47 }
  0x37   : > { %1054 = vmatprep.subr.bf16.mxu1 %v1135_v1 }
  0x39   : > { %1004 = vmatpush3.bf16.msra.mxu0 %v1113_v48 }
  0x3a   : > { %1055 = vmatpush3.bf16.msra.mxu1 %v1114_v49  ;;  %1005 = vmatprep.subr.bf16.mxu0 %v1115_v50 }
  0x3b   : > { %1056 = vmatprep.subr.bf16.mxu1 %v1135_v1 }
  0x3d   : > { %1006 = vmatpush3.bf16.msra.mxu0 %v1116_v51 }
  0x3e   : > { %1057 = vmatpush3.bf16.msra.mxu1 %v1117_v52  ;;  %1007 = vmatprep.subr.bf16.mxu0 %v1118_v53 }
  0x3f   : > { %1058 = vmatprep.subr.bf16.mxu1 %v1135_v1 }
  0x41   : > { %1008 = vmatpush3.bf16.msra.mxu0 %v1119_v54 }
  0x42   : > { %1059 = vmatpush3.bf16.msra.mxu1 %v1120_v55  ;;  %1009 = vmatprep.subr.bf16.mxu0 %v1121_v56 }
  0x43   : > { %1060 = vmatprep.subr.bf16.mxu1 %v1135_v1 }
  0x45   : > { %1010 = vmatpush3.bf16.msra.mxu0 %v1122_v57 }
  0x46   : > { %1061 = vmatpush3.bf16.msra.mxu1 %v1123_v58  ;;  %1011 = vmatprep.subr.bf16.mxu0 %v1124_v59 }
  0x47   : > { %1062 = vmatprep.subr.bf16.mxu1 %v1135_v1 }
  0x49   : > { %1012 = vmatpush3.bf16.msra.mxu0 %v1125_v60 }
  0x4a   : > { %1063 = vmatpush3.bf16.msra.mxu1 %v1126_v61 }
  0xec   : > { %v982_v62 = vpop.f32.mrf.mxu0 }
  0xed   : > { %v521_v63 = vpop.f32.mrf.mxu1 }
  0xee   : > { %v983_v2 = vpop.f32.mrf.mxu0 }
  0xef   : > { %v984_v3 = vadd.f32 %v983_v2, %v982_v62  ;;  %v1046_v1 = vpop.f32.mrf.mxu1 }
  0xf0   : > { %v985_v4 = vpop.f32.mrf.mxu0 }
  0xf1   : > { %v481_v5 = vadd.f32 %v984_v3, %v898_v0  ;;  %v524_v6 = vpop.f32.mrf.mxu1 }
  0xf2   : > { %v986_v7 = vpop.f32.mrf.mxu0 }
  0xf3   : > { %v522_v8 = vadd.f32 %v521_v63, %v481_v5  ;;  %v987_v9 = vadd.f32 %v986_v7, %v985_v4  ;;  %v1047_v10 = vpop.f32.mrf.mxu1 }
  0xf5   : > { %v484_v11 = vadd.f32 %v987_v9, %v898_v0  ;;  %v528_v12 = vmax.f32 %v522_v8, 0.0 }
  0xf7   : > { %v525_v13 = vadd.f32 %v524_v6, %v484_v11  ;;  %v532_v15 = vrot.slane %v528_v12, 7  ;;  %v538_v16 = vrot.slane %v528_v12, 1 }
  0xf9   : > { %v529_v14 = vmax.f32 %v525_v13, 0.0 }
  0xfb   : > { %v533_v17 = vrot.slane %v529_v14, 7  ;;  %v539_v18 = vrot.slane %v529_v14, 1  ;;  %v545_v19 = vpack.c.bf16 %v529_v14, %v528_v12 }
  0xfd   : > { %v540_v20 = vsel %vm237_vm3, %v538_v16, %v539_v18  ;;  %778 = vmatprep.mubr.bf16.mxu0 %v545_v19  ;;  %v534_v21 = vsel %vm230_vm1, %v532_v15, %v533_v17 }
  0xfe   : > { %v960_v22 = vpack.c.bf16 %v539_v18, %v540_v20  ;;  %v957_v25 = vpack.c.bf16 %v534_v21, %v532_v15 }
 0x100   : > { %958 = vmatmul.mubr.msk.bf16.vlgmr.msra.gmra.mxu0 %vm1281_vm5, %v957_v25  ;;  %1065 = vmatmul.mubr.msk.bf16.vlgmr.msra.gmra.mxu1 %vm1291_vm6, %v960_v22 }
 0x1c0   : > { %v1013_v26 = vpop.f32.mrf.mxu0  ;;  %v821_v27 = vpop.f32.mrf.mxu1 }
 0x1c2   : > { %v1014_v29 = vpop.f32.mrf.mxu0  ;;  %v1066_v30 = vpop.f32.mrf.mxu1 }
 0x1c3   : > { %v1015_v31 = vadd.f32 %v1014_v29, %v1013_v26 }
 0x1c4   : > { %v1016_v32 = vpop.f32.mrf.mxu0  ;;  %v824_v34 = vpop.f32.mrf.mxu1 }
 0x1c5   : > { %v781_v35 = vadd.f32 %v1015_v31, %v930_v28 }
 0x1c6   : > { %v1017_v37 = vpop.f32.mrf.mxu0  ;;  %v1067_v38 = vpop.f32.mrf.mxu1 }
 0x1c7   : > { %v822_v33 = vadd.f32 %v821_v27, %v781_v35  ;;  %v1018_v39 = vadd.f32 %v1017_v37, %v1016_v32 }
 0x1c9   : > { %v828_v36 = vadd.f32 %v822_v33, %v1262_v23  ;;  %v784_v40 = vadd.f32 %v1018_v39, %v930_v28 }
 0x1cb   : > { %v830_v41 = vmax.f32 %v828_v36, 0.0  ;;  %v825_v42 = vadd.f32 %v824_v34, %v784_v40 }
 0x1cd   : > { %832 = vst [vmem:[%s224_s12] sm:$0xff] %v830_v41  ;;  %v829_v43 = vadd.f32 %v825_v42, %v1264_v24 }
 0x1cf   : > { %v831_v44 = vmax.f32 %v829_v43, 0.0 }
 0x1d1   : > { %833 = vst [vmem:[%s224_s12 + $0x8] sm:$0xff] %v831_v44 }
 0x1d2 PF: > { %s15_s18 = sadd.s32 1, %s1133_s18  }
 0x1d3   : > { %p12_p4 = scmp.ge.s32.totalorder %s15_s18, 4  }
 0x1d5   :  { %14 = sbr.rel (!%p12_p4) target bundleno = 1 (0x1), region = 70 }

</bundles_post_ra>
